<compile_context>
chip_gen: v6e
topology: v6e:2x2x1
jax: 0.10.0
libtpu: 0.0.40
codegen_flags: <defaults>
</compile_context>

<pallas_src>
import functools

import numpy as np
import jax
import jax.numpy as jnp
from jax.experimental import pallas as pl
from jax.experimental.pallas import tpu as pltpu


def _round_up(x, m):
    return ((x + m - 1) // m) * m


def _num_tensorcores():
    """Best-effort TensorCore count per device (2 on v7x, 1 on v5e/v6e)."""
    try:
        info = pltpu.get_tpu_info()
        for name in ("num_cores", "core_count", "num_tensorcores",
                     "tensorcores_per_chip", "cores_per_chip"):
            v = getattr(info, name, None)
            if isinstance(v, int) and v > 0:
                return v
    except Exception:
        pass
    try:
        kind = jax.devices()[0].device_kind.lower()
        if "v7" in kind or "7x" in kind:
            return 2
    except Exception:
        pass
    return 1


def _adversary_kernel(x_ref, w1_ref, w234_ref, b_ref, o_ref, *, cols, n_sens):
    """One batch tile: 4 matmuls on the MXU (f32 accumulation), ReLU on the
    VPU, sigmoid's exp on the EUP.  Padded weight/bias columns are zero, so
    padded lanes stay zero through every ReLU and contribute nothing."""
    f32 = jnp.float32
    x = x_ref[...]
    bias = b_ref[...]                      # (4, cols), f32, zero-padded rows
    cdt = w234_ref.dtype                   # compute dtype (f32 or bf16)

    h = jnp.dot(x, w1_ref[...], preferred_element_type=f32) + bias[0:1, :]
    h = jnp.maximum(h, 0.0)

    w2 = w234_ref[pl.ds(0 * cols, cols), :]
    w3 = w234_ref[pl.ds(1 * cols, cols), :]
    w4 = w234_ref[pl.ds(2 * cols, cols), :]

    h = jnp.dot(h.astype(cdt), w2, preferred_element_type=f32) + bias[1:2, :]
    h = jnp.maximum(h, 0.0)
    h = jnp.dot(h.astype(cdt), w3, preferred_element_type=f32) + bias[2:3, :]
    h = jnp.maximum(h, 0.0)
    z = jnp.dot(h.astype(cdt), w4, preferred_element_type=f32) + bias[3:4, :]

    # Only the real n_sensitive columns are computed through sigmoid & stored
    # (out block last dim == full array last dim: no 128-lane write inflation).
    z = z[:, :n_sens]
    y = 1.0 / (1.0 + jnp.exp(-z))          # sigmoid; exp lands on the EUP
    o_ref[...] = y.astype(o_ref.dtype)


def reference_forward(x, params):
    h = jnp.maximum(x @ params["w1"] + params["b1"], 0.0)
    h = jnp.maximum(h @ params["w2"] + params["b2"], 0.0)
    h = jnp.maximum(h @ params["w3"] + params["b3"], 0.0)
    return jax.nn.sigmoid(h @ params["w4"] + params["b4"])


def adversary_forward(x, params, *, batch_tile=2048, out_dtype=jnp.float32,
                      compute_dtype=None, min_batch_for_kernel=512,
                      force_kernel=False):
    """Adversary forward.  x: (B, n_y) f32.  params: w{i}: (in, out),
    b{i}: (1, out).  Returns (B, n_sensitive) in out_dtype."""
    B, n_y = x.shape
    H = params["w1"].shape[1]
    n_sens = params["w4"].shape[1]
    if compute_dtype is None:
        compute_dtype = x.dtype

    # Tiny batches: pallas_call fixed cost dwarfs 4 tiny matmuls -> plain XLA.
    if not force_kernel and B < min_batch_for_kernel:
        return reference_forward(x, params).astype(out_dtype)

    # ---- pack parameters ---------------------------------------------------
    # A single shared column width so successive layers chain without slicing;
    # padded columns carry zero weights + zero bias -> stay zero after ReLU.
    cols = _round_up(max(H, n_sens), 8)

    def pad_to(w, rows, cs):
        out = jnp.zeros((rows, cs), compute_dtype)
        return out.at[:w.shape[0], :w.shape[1]].set(w.astype(compute_dtype))

    w1p = pad_to(params["w1"], n_y, cols)                       # (n_y, cols)
    w234 = jnp.concatenate(
        [pad_to(params["w2"], cols, cols),
         pad_to(params["w3"], cols, cols),
         pad_to(params["w4"], cols, cols)], axis=0)             # (3*cols, cols)
    b_all = jnp.zeros((4, cols), jnp.float32)
    for i in range(4):
        b = params[f"b{i + 1}"].reshape(-1).astype(jnp.float32)
        b_all = b_all.at[i, :b.shape[0]].set(b)

    x_in = x.astype(compute_dtype)

    # ---- batch tiling (generation-aware) ------------------------------------
    n_cores = _num_tensorcores()
    # v7x (2 TCs): >=2 steps per core so each core pipelines its writeback.
    # v5e/v6e (1 TC): extra steps are a serial loop -> don't force a split.
    target_steps = 2 * n_cores if n_cores > 1 else 1
    n_steps = max(target_steps, pl.cdiv(B, batch_tile))
    n_steps = max(1, min(n_steps, pl.cdiv(B, 8)))   # never below 8 rows/step
    tile = _round_up(pl.cdiv(B, n_steps), 8)
    B_pad = _round_up(B, tile)
    if B_pad != B:
        x_in = jnp.pad(x_in, ((0, B_pad - B), (0, 0)))
    grid = (B_pad // tile,)

    kernel = functools.partial(_adversary_kernel, cols=cols, n_sens=n_sens)

    def resident(shape):
        # Tiny parameter blocks: same full block every step (loaded once).
        return pl.BlockSpec(shape, lambda i: (0,) * len(shape))

    itm_in = np.dtype(compute_dtype).itemsize
    itm_out = np.dtype(out_dtype).itemsize
    cost = pl.CostEstimate(
        flops=2 * B_pad * (n_y * cols + 3 * cols * cols),
        transcendentals=B_pad * n_sens,
        bytes_accessed=(itm_in * (B_pad * n_y + n_y * cols + 3 * cols * cols)
                        + 4 * 4 * cols
                        + itm_out * B_pad * n_sens),
    )

    out = pl.pallas_call(
        kernel,
        out_shape=jax.ShapeDtypeStruct((B_pad, n_sens), out_dtype),
        grid_spec=pl.GridSpec(
            grid=grid,
            in_specs=[
                pl.BlockSpec((tile, n_y), lambda i: (i, 0)),    # x tile
                resident(w1p.shape),
                resident(w234.shape),
                resident(b_all.shape),
            ],
            out_specs=pl.BlockSpec((tile, n_sens), lambda i: (i, 0)),
        ),
        compiler_params=pltpu.CompilerParams(
            dimension_semantics=("parallel",)),
        cost_estimate=cost,
    )(x_in, w1p, w234, b_all)

    return out[:B] if B_pad != B else out


def init_params(key, n_sensitive, n_y, n_hidden=32):
    """Deterministic synthetic init (PyTorch-Linear-like uniform fan-in)."""
    keys = jax.random.split(key, 8)
    dims = [(n_y, n_hidden), (n_hidden, n_hidden),
            (n_hidden, n_hidden), (n_hidden, n_sensitive)]
    params = {}
    for idx, (fan_in, fan_out) in enumerate(dims, start=1):
        bound = 1.0 / jnp.sqrt(fan_in)
        # stored as (in, out) == transpose of PyTorch's (out, in)
        params[f"w{idx}"] = jax.random.uniform(
            keys[2 * (idx - 1)], (fan_in, fan_out), jnp.float32, -bound, bound)
        params[f"b{idx}"] = jax.random.uniform(
            keys[2 * (idx - 1) + 1], (1, fan_out), jnp.float32, -bound, bound)
    return params


if __name__ == "__main__":
    n_sensitive, n_y, n_hidden = 3, 4, 32

    key = jax.random.PRNGKey(0)
    k_params, k_x1, k_x2 = jax.random.split(key, 3)
    params = init_params(k_params, n_sensitive, n_y, n_hidden)

    # Tolerance note: both the Mosaic kernel and the XLA reference run f32
    # matmuls through the MXU, whose default-precision pass structure can
    # differ between the two lowerings; 5e-3 comfortably covers that while
    # still catching any layout/weight/bias bug (those give errors ~0.1+).
    tol = dict(atol=5e-3, rtol=5e-3)

    # 1) Small batch, forcing the Pallas path so the kernel itself is run.
    x_small = jax.random.normal(k_x1, (16, n_y), jnp.float32)
    out_small = jax.block_until_ready(
        adversary_forward(x_small, params, force_kernel=True))
    ref_small = reference_forward(x_small, params)
    assert out_small.shape == (16, n_sensitive)
    assert jnp.allclose(out_small, ref_small, **tol), "small-batch mismatch"

    # 2) Larger batch that is not a multiple of the tile: exercises row
    #    padding and a multi-step grid (kernel path, no forcing needed).
    x_big = jax.random.normal(k_x2, (600, n_y), jnp.float32)
    out_big = jax.block_until_ready(
        adversary_forward(x_big, params, batch_tile=256))
    ref_big = reference_forward(x_big, params)
    assert out_big.shape == (600, n_sensitive)
    assert jnp.allclose(out_big, ref_big, **tol), "large-batch mismatch"

    print("KERNEL_OK")
</pallas_src>

<mosaic_0001>
module attributes {stable_mosaic.version = 11 : i64} {
  func.func @_adversary_kernel(%arg0: i32, %arg1: memref<16x4xf32, #tpu.memory_space<vmem>>, %arg2: memref<4x32xf32, #tpu.memory_space<vmem>>, %arg3: memref<96x32xf32, #tpu.memory_space<vmem>>, %arg4: memref<4x32xf32, #tpu.memory_space<vmem>>, %arg5: memref<16x3xf32, #tpu.memory_space<vmem>>) attributes {dimension_semantics = [#tpu.dimension_semantics<parallel>], iteration_bounds = array<i64: 1>, scalar_prefetch = 0 : i64, scratch_operands = 0 : i64, tpu.core_type = #tpu.core_type<tc>, window_params = [{transform_indices = @transform_0, window_bounds = array<i64: 16, 4>}, {pipeline_mode = #tpu.pipeline_mode<synchronous>, transform_indices = @transform_1, window_bounds = array<i64: 4, 32>}, {pipeline_mode = #tpu.pipeline_mode<synchronous>, transform_indices = @transform_2, window_bounds = array<i64: 96, 32>}, {pipeline_mode = #tpu.pipeline_mode<synchronous>, transform_indices = @transform_3, window_bounds = array<i64: 4, 32>}, {transform_indices = @transform_4, window_bounds = array<i64: 16, 3>}]} {
    %c0 = arith.constant 0 : index
    %c0_0 = arith.constant 0 : index
    %0 = vector.load %arg1[%c0, %c0_0] : memref<16x4xf32, #tpu.memory_space<vmem>>, vector<16x4xf32>
    %c0_1 = arith.constant 0 : index
    %c0_2 = arith.constant 0 : index
    %1 = vector.load %arg4[%c0_1, %c0_2] : memref<4x32xf32, #tpu.memory_space<vmem>>, vector<4x32xf32>
    %c0_3 = arith.constant 0 : index
    %c0_4 = arith.constant 0 : index
    %2 = vector.load %arg2[%c0_3, %c0_4] : memref<4x32xf32, #tpu.memory_space<vmem>>, vector<4x32xf32>
    %cst = arith.constant dense<0.000000e+00> : vector<16x32xf32>
    %3 = tpu.matmul %0, %2, %cst {dimension_numbers = #tpu.dot_dimension_numbers<[1], [0], [0], [1], [0, 0, 1, 1], [], []>} : vector<16x4xf32>, vector<4x32xf32>, vector<16x32xf32> -> vector<16x32xf32>
    %4 = vector.extract_strided_slice %1 {offsets = [0, 0], sizes = [1, 32], strides = [1, 1]} : vector<4x32xf32> to vector<1x32xf32>
    %5 = vector.broadcast %4 : vector<1x32xf32> to vector<16x32xf32>
    %6 = arith.addf %3, %5 : vector<16x32xf32>
    %cst_5 = arith.constant 0.000000e+00 : f32
    %7 = vector.broadcast %cst_5 : f32 to vector<16x32xf32>
    %8 = arith.maximumf %6, %7 : vector<16x32xf32>
    %c0_6 = arith.constant 0 : index
    %c0_7 = arith.constant 0 : index
    %9 = vector.load %arg3[%c0_6, %c0_7] : memref<96x32xf32, #tpu.memory_space<vmem>>, vector<32x32xf32>
    %c32 = arith.constant 32 : index
    %c0_8 = arith.constant 0 : index
    %10 = vector.load %arg3[%c32, %c0_8] : memref<96x32xf32, #tpu.memory_space<vmem>>, vector<32x32xf32>
    %c64 = arith.constant 64 : index
    %c0_9 = arith.constant 0 : index
    %11 = vector.load %arg3[%c64, %c0_9] : memref<96x32xf32, #tpu.memory_space<vmem>>, vector<32x32xf32>
    %cst_10 = arith.constant dense<0.000000e+00> : vector<16x32xf32>
    %12 = tpu.matmul %8, %9, %cst_10 {dimension_numbers = #tpu.dot_dimension_numbers<[1], [0], [0], [1], [0, 0, 1, 1], [], []>} : vector<16x32xf32>, vector<32x32xf32>, vector<16x32xf32> -> vector<16x32xf32>
    %13 = vector.extract_strided_slice %1 {offsets = [1, 0], sizes = [1, 32], strides = [1, 1]} : vector<4x32xf32> to vector<1x32xf32>
    %14 = vector.broadcast %13 : vector<1x32xf32> to vector<16x32xf32>
    %15 = arith.addf %12, %14 : vector<16x32xf32>
    %cst_11 = arith.constant 0.000000e+00 : f32
    %16 = vector.broadcast %cst_11 : f32 to vector<16x32xf32>
    %17 = arith.maximumf %15, %16 : vector<16x32xf32>
    %cst_12 = arith.constant dense<0.000000e+00> : vector<16x32xf32>
    %18 = tpu.matmul %17, %10, %cst_12 {dimension_numbers = #tpu.dot_dimension_numbers<[1], [0], [0], [1], [0, 0, 1, 1], [], []>} : vector<16x32xf32>, vector<32x32xf32>, vector<16x32xf32> -> vector<16x32xf32>
    %19 = vector.extract_strided_slice %1 {offsets = [2, 0], sizes = [1, 32], strides = [1, 1]} : vector<4x32xf32> to vector<1x32xf32>
    %20 = vector.broadcast %19 : vector<1x32xf32> to vector<16x32xf32>
    %21 = arith.addf %18, %20 : vector<16x32xf32>
    %cst_13 = arith.constant 0.000000e+00 : f32
    %22 = vector.broadcast %cst_13 : f32 to vector<16x32xf32>
    %23 = arith.maximumf %21, %22 : vector<16x32xf32>
    %cst_14 = arith.constant dense<0.000000e+00> : vector<16x32xf32>
    %24 = tpu.matmul %23, %11, %cst_14 {dimension_numbers = #tpu.dot_dimension_numbers<[1], [0], [0], [1], [0, 0, 1, 1], [], []>} : vector<16x32xf32>, vector<32x32xf32>, vector<16x32xf32> -> vector<16x32xf32>
    %25 = vector.extract_strided_slice %1 {offsets = [3, 0], sizes = [1, 32], strides = [1, 1]} : vector<4x32xf32> to vector<1x32xf32>
    %26 = vector.broadcast %25 : vector<1x32xf32> to vector<16x32xf32>
    %27 = arith.addf %24, %26 : vector<16x32xf32>
    %28 = vector.extract_strided_slice %27 {offsets = [0, 0], sizes = [16, 3], strides = [1, 1]} : vector<16x32xf32> to vector<16x3xf32>
    %cst_15 = arith.constant 0.000000e+00 : f32
    %29 = vector.broadcast %cst_15 : f32 to vector<16x3xf32>
    %30 = arith.subf %29, %28 : vector<16x3xf32>
    %31 = math.exp %30 : vector<16x3xf32>
    %cst_16 = arith.constant 1.000000e+00 : f32
    %32 = vector.broadcast %cst_16 : f32 to vector<16x3xf32>
    %33 = arith.addf %32, %31 : vector<16x3xf32>
    %cst_17 = arith.constant 1.000000e+00 : f32
    %34 = vector.broadcast %cst_17 : f32 to vector<16x3xf32>
    %35 = arith.divf %34, %33 : vector<16x3xf32>
    %c0_18 = arith.constant 0 : index
    %c0_19 = arith.constant 0 : index
    %36 = vector.load %arg5[%c0_18, %c0_19] : memref<16x3xf32, #tpu.memory_space<vmem>>, vector<16x3xf32>
    tpu.vector_store %arg5[%c0_18, %c0_19], %35 {strides = array<i32>} : memref<16x3xf32, #tpu.memory_space<vmem>>, vector<16x3xf32>,
    return
  }
  func.func @transform_0(%arg0: i32) -> (i32, i32) {
    %c0_i32 = arith.constant 0 : i32
    %c0_i32_0 = arith.constant 0 : i32
    return %arg0, %c0_i32 : i32, i32
  }
  func.func @transform_1(%arg0: i32) -> (i32, i32) {
    %c0_i32 = arith.constant 0 : i32
    %c0_i32_0 = arith.constant 0 : i32
    %c0_i32_1 = arith.constant 0 : i32
    return %c0_i32, %c0_i32_0 : i32, i32
  }
  func.func @transform_2(%arg0: i32) -> (i32, i32) {
    %c0_i32 = arith.constant 0 : i32
    %c0_i32_0 = arith.constant 0 : i32
    %c0_i32_1 = arith.constant 0 : i32
    return %c0_i32, %c0_i32_0 : i32, i32
  }
  func.func @transform_3(%arg0: i32) -> (i32, i32) {
    %c0_i32 = arith.constant 0 : i32
    %c0_i32_0 = arith.constant 0 : i32
    %c0_i32_1 = arith.constant 0 : i32
    return %c0_i32, %c0_i32_0 : i32, i32
  }
  func.func @transform_4(%arg0: i32) -> (i32, i32) {
    %c0_i32 = arith.constant 0 : i32
    %c0_i32_0 = arith.constant 0 : i32
    return %arg0, %c0_i32 : i32, i32
  }
}

</mosaic_0001>

<bundles_post_ra>
// kernel: tpu_custom_call.1
= control target key start
LH: loop header
LB: loop body
LE: loop exit
PB: predicated region body
PF: predicated region fallthrough
CT: control target
= control target key end

     0   :  { %vm32_vm0 = vcmask 1043456   ;;  %vm25_vm1 = vcmask 31744   ;;  %v21_v7 = vlaneseq  ;;  %vm129_vm2 = vcmask 261120   ;;  %s565_s1 = inlined_call_operand.vmem [shape: f32[4,32], index: 1, kind: input, shape index: {}]   ;;  %s566_s0 = inlined_call_operand.vmem [shape: f32[16,4], index: 0, kind: input, shape index: {}]   ;;  %s567_s2 = inlined_call_operand.vmem [shape: f32[96,32], index: 2, kind: input, shape index: {}]   ;;  %s568_s3 = inlined_call_operand.vmem [shape: f32[4,32], index: 3, kind: input, shape index: {}]   ;;  %s569_s4 = inlined_call_operand.vmem [shape: f32[16,3], index: 4, kind: output, shape index: {}]  }
   0x1   :  { %v20_v0 = vld [vmem:[%s565_s1] sm:$0xf]  ;;  %v18_v2 = vld [vmem:[%s566_s0 + $0x8] sm:$0xff]  ;;  %v116_v3 = vld [vmem:[%s567_s2 + $0x18] sm:$0xff]  ;;  %vm397_vm3 = vcmask 23552  }
   0x2   :  { %v17_v1 = vld [vmem:[%s566_s0] sm:$0xff]  ;;  %434 = vmatprep.subr.msk.mxu0 %vm32_vm0, %v20_v0  ;;  %439 = vmatprep.subr.mxu1 %v116_v3  ;;  %v115_v4 = vld [vmem:[%s567_s2 + $0x10] sm:$0xff]  ;;  %v114_v5 = vld [vmem:[%s567_s2 + $0x8] sm:$0xff]  ;;  %v22_v8 = vshrl.u32 %v21_v7, 7 }
   0x3   :  { %436 = vmatprep.mubr.msk.f32.mxu0 %vm25_vm1, %v17_v1  ;;  %435 = vmatpush3.msk.msra.mxu0 %vm32_vm0, %v20_v0  ;;  %v113_v6 = vld [vmem:[%s567_s2] sm:$0xff]  ;;  %v120_v18 = vld [vmem:[%s567_s2 + $0x38] sm:$0xff]  ;;  %v119_v19 = vld [vmem:[%s567_s2 + $0x30] sm:$0xff] }
   0x4   :  { %437 = vmatmul.mubr.msk.f32.vlgmr.msra.gmra.mxu0 %vm25_vm1, %v18_v2  ;;  %440 = vmatpush3.msra.mxu1 %v116_v3  ;;  %v23_v9 = vsub.s32 0, %v22_v8  ;;  %v19_v10 = vld [vmem:[%s568_s3] sm:$0xf]  ;;  %v118_v20 = vld [vmem:[%s567_s2 + $0x28] sm:$0xff]  ;;  %v127_v22 = vsub.s32 1, %v22_v8  ;;  %v124_v30 = vld [vmem:[%s567_s2 + $0x58] sm:$0xff] }
   0x5   :  { %441 = vmatprep.subr.mxu1 %v115_v4  ;;  %450 = vmatprep.subr.mxu0 %v120_v18  ;;  %v117_v21 = vld [vmem:[%s567_s2 + $0x20] sm:$0xff]  ;;  %v123_v31 = vld [vmem:[%s567_s2 + $0x50] sm:$0xff]  ;;  %v122_v32 = vld [vmem:[%s567_s2 + $0x48] sm:$0xff]  ;;  %v215_v34 = vsub.s32 2, %v22_v8  ;;  %v302_v42 = vsub.s32 3, %v22_v8 }
   0x6   :  { %442 = vmatpush3.msra.mxu1 %v115_v4  ;;  %v24_v11 = vrot.slane %v19_v10, %v23_v9  ;;  %451 = vmatpush3.msra.mxu0 %v120_v18  ;;  %v128_v23 = vrot.slane %v19_v10, %v127_v22  ;;  %v121_v33 = vld [vmem:[%s567_s2 + $0x40] sm:$0xff] }
   0x7   :  { %443 = vmatprep.subr.mxu1 %v114_v5  ;;  %452 = vmatprep.subr.mxu0 %v119_v19  ;;  %v216_v35 = vrot.slane %v19_v10, %v215_v34  ;;  %v303_v43 = vrot.slane %v19_v10, %v302_v42 }
   0x8   :  { %444 = vmatpush3.msra.mxu1 %v114_v5  ;;  %453 = vmatpush3.msra.mxu0 %v119_v19 }
   0x9   :  { %445 = vmatprep.subr.mxu1 %v113_v6  ;;  %454 = vmatprep.subr.mxu0 %v118_v20 }
   0xa   :  { %446 = vmatpush3.msra.mxu1 %v113_v6  ;;  %455 = vmatpush3.msra.mxu0 %v118_v20 }
   0xb   :  { %456 = vmatprep.subr.mxu0 %v117_v21  ;;  %461 = vmatprep.subr.mxu1 %v124_v30 }
   0xc   :  { %457 = vmatpush3.msra.mxu0 %v117_v21 }
  0xc4   :  { %v438_v12 = vpop.f32.mrf.mxu0 }
  0xc5   :  { %v108_v13 = vadd.f32 %v438_v12, %v24_v11 }
  0xc6   :  { %v102_v14 = vpop.f32.mrf.mxu0 }
  0xc7   :  { %v103_v15 = vadd.f32 %v102_v14, %v24_v11  ;;  %v112_v17 = vmax.f32 %v108_v13, 0.0 }
  0xc9   :  { %v111_v16 = vmax.f32 %v103_v15, 0.0 }
  0xcb   :  { %447 = vmatprep.mubr.msk.f32.mxu1 %vm129_vm2, %v111_v16 }
  0xcc   :  { %448 = vmatmul.mubr.msk.f32.vlgmr.msra.gmra.mxu1 %vm129_vm2, %v112_v17 }
  0xcd   :  { %462 = vmatpush3.msra.mxu1 %v124_v30 }
  0xce   :  { %463 = vmatprep.subr.mxu1 %v123_v31 }
  0xcf   :  { %464 = vmatpush3.msra.mxu1 %v123_v31 }
  0xd0   :  { %465 = vmatprep.subr.mxu1 %v122_v32 }
  0xd1   :  { %466 = vmatpush3.msra.mxu1 %v122_v32 }
  0xd2   :  { %467 = vmatprep.subr.mxu1 %v121_v33 }
  0xd3   :  { %468 = vmatpush3.msra.mxu1 %v121_v33 }
 0x18c   :  { %v449_v24 = vpop.f32.mrf.mxu1 }
 0x18d   :  { %v208_v25 = vadd.f32 %v449_v24, %v128_v23 }
 0x18e   :  { %v202_v26 = vpop.f32.mrf.mxu1 }
 0x18f   :  { %v203_v27 = vadd.f32 %v202_v26, %v128_v23  ;;  %v212_v29 = vmax.f32 %v208_v25, 0.0 }
 0x191   :  { %v211_v28 = vmax.f32 %v203_v27, 0.0 }
 0x193   :  { %458 = vmatprep.mubr.msk.f32.mxu0 %vm129_vm2, %v211_v28 }
 0x194   :  { %459 = vmatmul.mubr.msk.f32.vlgmr.msra.gmra.mxu0 %vm129_vm2, %v212_v29 }
 0x254   :  { %v460_v36 = vpop.f32.mrf.mxu0 }
 0x255   :  { %v295_v37 = vadd.f32 %v460_v36, %v216_v35 }
 0x256   :  { %v289_v38 = vpop.f32.mrf.mxu0 }
 0x257   :  { %v290_v39 = vadd.f32 %v289_v38, %v216_v35  ;;  %v299_v41 = vmax.f32 %v295_v37, 0.0 }
 0x259   :  { %v298_v40 = vmax.f32 %v290_v39, 0.0 }
 0x25b   :  { %469 = vmatprep.mubr.msk.f32.mxu1 %vm129_vm2, %v298_v40 }
 0x25c   :  { %470 = vmatmul.mubr.msk.f32.vlgmr.msra.gmra.mxu1 %vm129_vm2, %v299_v41 }
 0x31c   :  { %v471_v44 = vpop.f32.mrf.mxu1 }
 0x31d   :  { %v382_v45 = vadd.f32 %v471_v44, %v303_v43 }
 0x31e   :  { %v376_v46 = vpop.f32.mrf.mxu1 }
 0x31f   :  { %v386_v47 = vsub.f32 0.0, %v382_v45  ;;  %v377_v48 = vadd.f32 %v376_v46, %v303_v43 }
 0x321   :  { %v389_v49 = vmul.f32 1.442695, %v386_v47  ;;  %v385_v50 = vsub.f32 0.0, %v377_v48 }
 0x323   :  { %472 = vpow2.f32 %v389_v49  ;;  %v387_v51 = vmul.f32 1.442695, %v385_v50 }
 0x325   :  { %474 = vpow2.f32 %v387_v51 }
 0x330   :  { %v473_v52 = vpop.eup %472 }
 0x331   :  { %v392_v53 = vadd.f32 1.0, %v473_v52 }
 0x332   :  { %v475_v54 = vpop.eup %474 }
 0x333   :  { %476 = vrcp.f32 %v392_v53  ;;  %v391_v55 = vadd.f32 1.0, %v475_v54 }
 0x335   :  { %478 = vrcp.f32 %v391_v55 }
 0x340   :  { %v477_v56 = vpop.eup %476 }
 0x341   :  { %399 = vst.msk [vmem:[%s569_s4 + $0x8] sm:$0xff] %vm397_vm3, %v477_v56 }
 0x342   :  { %v479_v57 = vpop.eup %478 }
 0x343   :  { %398 = vst.msk [vmem:[%s569_s4] sm:$0xff] %vm397_vm3, %v479_v57 }

</bundles_post_ra>
